<compile_context>
chip_gen: v7x
topology: tpu7x:2x2x1
jax: 0.10.0
libtpu: 0.0.40
codegen_flags: <defaults>
</compile_context>

<pallas_src>
import jax
import jax.numpy as jnp
from jax.experimental import pallas as pl
from jax.experimental.pallas import tpu as pltpu

EPS = 1e-5
LANE = 128


def _batchnorm_kernel(x_ref, gamma_ref, beta_ref, o_ref):
    # x_ref: (N, TILE_C) column slab; reduction over N happens in-block.
    x = x_ref[...].astype(jnp.float32)                     # (N, TILE_C)
    n = x.shape[0]
    inv_n = 1.0 / n
    mean = jnp.sum(x, axis=0, keepdims=True) * inv_n       # (1, TILE_C)
    centered = x - mean
    var = jnp.sum(centered * centered, axis=0, keepdims=True) * inv_n  # biased
    inv_std = jax.lax.rsqrt(var + EPS)                     # (1, TILE_C)
    scale = inv_std * gamma_ref[...]                       # (1, TILE_C)
    shift = beta_ref[...] - mean * scale                   # (1, TILE_C)
    o_ref[...] = (x * scale + shift).astype(o_ref.dtype)


def batchnorm_forward(x, gamma, beta):
    """x: (N, C); gamma, beta: (C,). Returns (N, C) with x.dtype."""
    N, C = x.shape

    # Pad channels to a lane-dense multiple of 128.
    C_pad = pl.cdiv(C, LANE) * LANE
    pad = C_pad - C
    if pad:
        x_p = jnp.pad(x, ((0, 0), (0, pad)))
        gamma_p = jnp.pad(gamma, (0, pad), constant_values=1.0)
        beta_p = jnp.pad(beta, (0, pad))
    else:
        x_p, gamma_p, beta_p = x, gamma, beta

    gamma2d = gamma_p.reshape(1, C_pad).astype(jnp.float32)
    beta2d = beta_p.reshape(1, C_pad).astype(jnp.float32)

    # Lane-dense tile, multiple of 128, capped so double-buffered slabs stay
    # comfortably inside scoped VMEM on every generation (incl. v7x 64 MiB).
    tile_c = LANE
    for cand in (512, 256, 128):
        if C_pad % cand == 0:
            tile_c = cand
            break
    grid_c = C_pad // tile_c

    out_p = pl.pallas_call(
        _batchnorm_kernel,
        out_shape=jax.ShapeDtypeStruct((N, C_pad), x.dtype),
        grid_spec=pltpu.PrefetchScalarGridSpec(
            num_scalar_prefetch=0,
            grid=(grid_c,),
            in_specs=[
                pl.BlockSpec((N, tile_c), lambda j: (0, j)),
                pl.BlockSpec((1, tile_c), lambda j: (0, j)),
                pl.BlockSpec((1, tile_c), lambda j: (0, j)),
            ],
            out_specs=pl.BlockSpec((N, tile_c), lambda j: (0, j)),
        ),
        compiler_params=pltpu.CompilerParams(
            dimension_semantics=("parallel",),
        ),
    )(x_p, gamma2d, beta2d)

    return out_p[:, :C] if pad else out_p


def batchnorm_reference(x, gamma, beta):
    xf = x.astype(jnp.float32)
    mean = jnp.mean(xf, axis=0, keepdims=True)
    var = jnp.mean((xf - mean) ** 2, axis=0, keepdims=True)
    y = (xf - mean) * jax.lax.rsqrt(var + EPS) * gamma[None, :] + beta[None, :]
    return y.astype(x.dtype)


if __name__ == "__main__":
    key = jax.random.PRNGKey(0)
    k1, k2, k3, k4, k5, k6 = jax.random.split(key, 6)

    # Case 1: channels already a multiple of 128 -> multiple lane-dense tiles.
    N, C = 8, 256
    x = jax.random.normal(k1, (N, C), dtype=jnp.float32)
    gamma = 1.0 + 0.1 * jax.random.normal(k2, (C,), dtype=jnp.float32)
    beta = 0.1 * jax.random.normal(k3, (C,), dtype=jnp.float32)

    out = jax.block_until_ready(batchnorm_forward(x, gamma, beta))
    ref = batchnorm_reference(x, gamma, beta)
    assert out.shape == x.shape and out.dtype == x.dtype
    assert jnp.allclose(out, ref, atol=1e-5, rtol=1e-5)

    # Case 2: channels NOT a multiple of 128 -> exercises the padding path.
    N2, C2 = 4, 48
    x2 = jax.random.normal(k4, (N2, C2), dtype=jnp.float32)
    gamma2 = 1.0 + 0.1 * jax.random.normal(k5, (C2,), dtype=jnp.float32)
    beta2 = 0.1 * jax.random.normal(k6, (C2,), dtype=jnp.float32)

    out2 = jax.block_until_ready(batchnorm_forward(x2, gamma2, beta2))
    ref2 = batchnorm_reference(x2, gamma2, beta2)
    assert out2.shape == x2.shape and out2.dtype == x2.dtype
    assert jnp.allclose(out2, ref2, atol=1e-5, rtol=1e-5)

    print("KERNEL_OK")
</pallas_src>

<mosaic_0001>
module attributes {stable_mosaic.version = 11 : i64} {
  func.func @_batchnorm_kernel(%arg0: i32, %arg1: memref<8x256xf32, #tpu.memory_space<vmem>>, %arg2: memref<1x256xf32, #tpu.memory_space<vmem>>, %arg3: memref<1x256xf32, #tpu.memory_space<vmem>>, %arg4: memref<8x256xf32, #tpu.memory_space<vmem>>) attributes {dimension_semantics = [#tpu.dimension_semantics<parallel>], iteration_bounds = array<i64: 1>, scalar_prefetch = 0 : i64, scratch_operands = 0 : i64, tpu.core_type = #tpu.core_type<tc>, window_params = [{transform_indices = @transform_0, window_bounds = array<i64: 8, 256>}, {transform_indices = @transform_1, window_bounds = array<i64: 1, 256>}, {transform_indices = @transform_2, window_bounds = array<i64: 1, 256>}, {transform_indices = @transform_3, window_bounds = array<i64: 8, 256>}]} {
    %c0 = arith.constant 0 : index
    %c0_0 = arith.constant 0 : index
    %0 = vector.load %arg1[%c0, %c0_0] : memref<8x256xf32, #tpu.memory_space<vmem>>, vector<8x256xf32>
    %cst = arith.constant dense<0.000000e+00> : vector<256xf32>
    %1 = vector.multi_reduction <add>, %0, %cst [0] : vector<8x256xf32> to vector<256xf32>
    %2 = vector.shape_cast %1 : vector<256xf32> to vector<1x256xf32>
    %cst_1 = arith.constant 1.250000e-01 : f32
    %3 = vector.broadcast %cst_1 : f32 to vector<1x256xf32>
    %4 = arith.mulf %2, %3 : vector<1x256xf32>
    %5 = vector.broadcast %4 : vector<1x256xf32> to vector<8x256xf32>
    %6 = arith.subf %0, %5 : vector<8x256xf32>
    %7 = arith.mulf %6, %6 : vector<8x256xf32>
    %cst_2 = arith.constant dense<0.000000e+00> : vector<256xf32>
    %8 = vector.multi_reduction <add>, %7, %cst_2 [0] : vector<8x256xf32> to vector<256xf32>
    %9 = vector.shape_cast %8 : vector<256xf32> to vector<1x256xf32>
    %cst_3 = arith.constant 1.250000e-01 : f32
    %10 = vector.broadcast %cst_3 : f32 to vector<1x256xf32>
    %11 = arith.mulf %9, %10 : vector<1x256xf32>
    %cst_4 = arith.constant 9.99999974E-6 : f32
    %12 = vector.broadcast %cst_4 : f32 to vector<1x256xf32>
    %13 = arith.addf %11, %12 : vector<1x256xf32>
    %14 = math.rsqrt %13 : vector<1x256xf32>
    %c0_5 = arith.constant 0 : index
    %c0_6 = arith.constant 0 : index
    %15 = vector.load %arg2[%c0_5, %c0_6] : memref<1x256xf32, #tpu.memory_space<vmem>>, vector<1x256xf32>
    %16 = arith.mulf %14, %15 : vector<1x256xf32>
    %c0_7 = arith.constant 0 : index
    %c0_8 = arith.constant 0 : index
    %17 = vector.load %arg3[%c0_7, %c0_8] : memref<1x256xf32, #tpu.memory_space<vmem>>, vector<1x256xf32>
    %18 = arith.mulf %4, %16 : vector<1x256xf32>
    %19 = arith.subf %17, %18 : vector<1x256xf32>
    %20 = vector.broadcast %16 : vector<1x256xf32> to vector<8x256xf32>
    %21 = arith.mulf %0, %20 : vector<8x256xf32>
    %22 = vector.broadcast %19 : vector<1x256xf32> to vector<8x256xf32>
    %23 = arith.addf %21, %22 : vector<8x256xf32>
    %c0_9 = arith.constant 0 : index
    %c0_10 = arith.constant 0 : index
    %24 = vector.load %arg4[%c0_9, %c0_10] : memref<8x256xf32, #tpu.memory_space<vmem>>, vector<8x256xf32>
    tpu.vector_store %arg4[%c0_9, %c0_10], %23 {strides = array<i32>} : memref<8x256xf32, #tpu.memory_space<vmem>>, vector<8x256xf32>,
    return
  }
  func.func @transform_0(%arg0: i32) -> (i32, i32) {
    %c0_i32 = arith.constant 0 : i32
    %c0_i32_0 = arith.constant 0 : i32
    return %c0_i32, %arg0 : i32, i32
  }
  func.func @transform_1(%arg0: i32) -> (i32, i32) {
    %c0_i32 = arith.constant 0 : i32
    %c0_i32_0 = arith.constant 0 : i32
    return %c0_i32, %arg0 : i32, i32
  }
  func.func @transform_2(%arg0: i32) -> (i32, i32) {
    %c0_i32 = arith.constant 0 : i32
    %c0_i32_0 = arith.constant 0 : i32
    return %c0_i32, %arg0 : i32, i32
  }
  func.func @transform_3(%arg0: i32) -> (i32, i32) {
    %c0_i32 = arith.constant 0 : i32
    %c0_i32_0 = arith.constant 0 : i32
    return %c0_i32, %arg0 : i32, i32
  }
}

</mosaic_0001>

<bundles_post_ra>
// kernel: tpu_custom_call.1
= control target key start
LH: loop header
LB: loop body
LE: loop exit
PB: predicated region body
PF: predicated region fallthrough
CT: control target
= control target key end

     0   :  { %8 = vsyncpa [#allocation3], 0  ;;  %s249_s0 = inlined_call_operand.hbm [shape: f32[8,256], index: 0, kind: input, shape index: {}]   ;;  %s250_s1 = inlined_call_operand.vmem [shape: f32[1,256], index: 1, kind: input, shape index: {}]   ;;  %s251_s2 = inlined_call_operand.vmem [shape: f32[1,256], index: 2, kind: input, shape index: {}]   ;;  %s252_s3 = inlined_call_operand.hbm [shape: f32[8,256], index: 3, kind: output, shape index: {}]  }
   0x1   :  { %9 = vsyncpa [#allocation4], 0  ;;  %s196_s12 = smov [#allocation2]   ;;  %s148_s16 = scalar_lea.hbm %s249_s0, 256 }
   0x2   :  { %s16_s13 = sshll.u32 %s196_s12, 4  ;;  %p149_p0 = scmp.ne.s32.totalorder %s249_s0, %s148_s16  ;;  %s17_s13 = int_to_ptr.vmem [resolvable:$true] %s16_s13 }
   0x3   :  { %p152_p1 = scmp.lt.u32.totalorder %s148_s16, %s249_s0 }
   0x5   :  { %p154_p2 = pnand %p152_p1, %p149_p0 }
   0x7   :  { %157 = shalt.err (!%p154_p2)
}
   0x8   :  { %s158_s21 = scalar_lea.vmem %s17_s13, 256  ;;  %p163_p4 = scmp.lt.s32.totalorder %s17_s13, %s17_s13 }
   0x9   :  { %p159_p3 = scmp.ne.s32.totalorder %s17_s13, %s158_s21  ;;  %p164_p5 = scmp.lt.s32.totalorder %s158_s21, %s158_s21 }
   0xb   :  { %p165_p6 = por %p164_p5, %p163_p4 }
   0xd   :  { %p166_p7 = pnand %p165_p6, %p159_p3 }
   0xf   :  { %169 = shalt.err (!%p166_p7)
}
  0x10   :  { %19 = dma.hbm_to_vmem [thread:$0]  %s249_s0, 256, %s17_s13, [#allocation3]  }
  0x11   :  { %192 = dma.done.wait [#allocation3], 256  }
  0x12   :  { %193 = vsyncadd [#allocation3], 4294967040  ;;  %v27_v0 = vld [vmem:[#allocation2] sm:$0xff]  ;;  %v28_v1 = vld [vmem:[#allocation2 + $0x8] sm:$0xff]  ;;  %v67_v32 = vlaneseq  ;;  %v197_v41 = vmov 1966171168  }
  0x13   :  { %v29_v2 = vrot.slane %v27_v0, 4  ;;  %v35_v3 = vrot.slane %v28_v1, 4  ;;  %v65_v39 = vld [vmem:[%s250_s1] sm:$0x3]  ;;  %v86_v42 = vunpack.c.l.s4 %v197_v41  ;;  %s198_s1 = smov [#allocation5]  }
  0x14   :  { %v68_v37 = vshrl.u32 %v67_v32, 7  ;;  %v79_v57 = vld [vmem:[%s251_s2] sm:$0x3]  ;;  %s132_s27 = sshll.u32 %s198_s1, 4  ;;  %s133_s27 = int_to_ptr.vmem [resolvable:$true] %s132_s27 }
  0x15   :  { %v30_v4 = vadd.f32 %v29_v2, %v27_v0  ;;  %v36_v5 = vadd.f32 %v35_v3, %v28_v1  ;;  %v87_v46 = vunpack.c.0.s8 %v86_v42  ;;  %s170_s28 = scalar_lea.vmem %s133_s27, 256  ;;  %p175_p9 = scmp.lt.s32.totalorder %s133_s27, %s133_s27 }
  0x16   :  { %v69_v38 = vsub.s32 0, %v68_v37  ;;  %v73_v40 = vsub.s32 1, %v68_v37  ;;  %p171_p8 = scmp.ne.s32.totalorder %s133_s27, %s170_s28  ;;  %p176_p10 = scmp.lt.s32.totalorder %s170_s28, %s170_s28 }
  0x17   :  { %v31_v6 = vrot.slane %v30_v4, 2  ;;  %v37_v7 = vrot.slane %v36_v5, 2  ;;  %v90_v52 = vsub.s32 %v87_v46, %v68_v37 }
  0x18   :  { %v70_v43 = vrot.slane %v65_v39, %v69_v38  ;;  %v74_v44 = vrot.slane %v65_v39, %v73_v40  ;;  %p177_p11 = por %p176_p10, %p175_p9 }
  0x19   :  { %v32_v8 = vadd.f32 %v31_v6, %v30_v4  ;;  %v38_v9 = vadd.f32 %v37_v7, %v36_v5 }
  0x1a   :  { %p178_p12 = pnand %p177_p11, %p171_p8 }
  0x1b   :  { %v33_v10 = vrot.slane %v32_v8, 1  ;;  %v39_v11 = vrot.slane %v38_v9, 1 }
  0x1d   :  { %v34_v12 = vadd.f32 %v33_v10, %v32_v8  ;;  %v40_v13 = vadd.f32 %v39_v11, %v38_v9 }
  0x1f   :  { %v41_v14 = vmul.f32 0.125, %v34_v12  ;;  %v42_v15 = vmul.f32 0.125, %v40_v13 }
  0x21   :  { %v43_v16 = vsub.f32 %v27_v0, %v41_v14  ;;  %v44_v17 = vsub.f32 %v28_v1, %v42_v15 }
  0x23   :  { %v45_v18 = vmul.f32 %v43_v16, %v43_v16  ;;  %v46_v19 = vmul.f32 %v44_v17, %v44_v17 }
  0x25   :  { %v47_v20 = vrot.slane %v45_v18, 4  ;;  %v53_v21 = vrot.slane %v46_v19, 4 }
  0x27   :  { %v48_v22 = vadd.f32 %v47_v20, %v45_v18  ;;  %v54_v23 = vadd.f32 %v53_v21, %v46_v19 }
  0x29   :  { %v49_v24 = vrot.slane %v48_v22, 2  ;;  %v55_v25 = vrot.slane %v54_v23, 2 }
  0x2b   :  { %v50_v26 = vadd.f32 %v49_v24, %v48_v22  ;;  %v56_v27 = vadd.f32 %v55_v25, %v54_v23 }
  0x2d   :  { %v51_v28 = vrot.slane %v50_v26, 1  ;;  %v57_v29 = vrot.slane %v56_v27, 1 }
  0x2f   :  { %v52_v30 = vadd.f32 %v51_v28, %v50_v26  ;;  %v58_v31 = vadd.f32 %v57_v29, %v56_v27 }
  0x31   :  { %v59_v33 = vmul.f32 0.125, %v52_v30  ;;  %v60_v34 = vmul.f32 0.125, %v58_v31 }
  0x33   :  { %v61_v35 = vadd.f32 1e-05, %v59_v33  ;;  %v62_v36 = vadd.f32 1e-05, %v60_v34 }
  0x35   :  { %144 = vrsqrt.f32 %v61_v35 }
  0x36   :  { %146 = vrsqrt.f32 %v62_v36 }
  0x3f   :  { %v145_v45 = vpop.eup %144 }
  0x40   :  { %v147_v47 = vpop.eup %146  ;;  %v77_v48 = vmul.f32 %v145_v45, %v70_v43 }
  0x41   :  { %v78_v49 = vmul.f32 %v147_v47, %v74_v44 }
  0x42   :  { %v80_v50 = vmul.f32 %v77_v48, %v41_v14  ;;  %v104_v55 = vrot.slane %v77_v48, %v69_v38 }
  0x43   :  { %v81_v51 = vmul.f32 %v78_v49, %v42_v15  ;;  %v108_v56 = vrot.slane %v78_v49, %v69_v38 }
  0x44   :  { %v109_v60 = vmul.f32 %v104_v55, %v27_v0 }
  0x45   :  { %v84_v53 = vcombine.low %v80_v50, %v81_v51  ;;  %v110_v61 = vmul.f32 %v108_v56, %v28_v1 }
  0x47   :  { %v91_v54 = vrot.slane %v84_v53, %v90_v52 }
  0x49   :  { %v98_v58 = vrot.slane %v91_v54, %v90_v52 }
  0x4b   :  { %v100_v59 = vsub.f32 %v79_v57, %v98_v58 }
  0x4d   :  { %v115_v62 = vrot.slane %v100_v59, %v69_v38  ;;  %v119_v63 = vrot.slane %v100_v59, %v73_v40 }
  0x4f   :  { %v122_v2 = vadd.f32 %v115_v62, %v109_v60  ;;  %v123_v3 = vadd.f32 %v119_v63, %v110_v61 }
  0x51   :  { %124 = vst [vmem:[#allocation5] sm:$0xff] %v122_v2  ;;  %125 = vst [vmem:[#allocation5 + $0x8] sm:$0xff] %v123_v3 }
  0x52   :  { %181 = shalt.err (!%p178_p12)
}
  0x53   :  { %s182_s30 = scalar_lea.hbm %s252_s3, 256 }
  0x54   :  { %p183_p13 = scmp.ne.s32.totalorder %s252_s3, %s182_s30  ;;  %p186_p0 = scmp.lt.u32.totalorder %s182_s30, %s252_s3 }
  0x56   :  { %p188_p1 = pnand %p186_p0, %p183_p13 }
  0x58   :  { %191 = shalt.err (!%p188_p1)
}
  0x59   :  { %135 = dma.vmem_to_hbm [thread:$0]  %s133_s27, 256, %s252_s3, [#allocation4]  }
  0x5a   :  { %194 = dma.done.wait [#allocation4], 256  }
  0x5b   :  { %195 = vsyncadd [#allocation4], 4294967040 }
  0x5c   :  { %139 = vsyncpa [#allocation3], 1 }
  0x5d   :  { %140 = vsyncpa [#allocation4], 1 }

</bundles_post_ra>
